<compile_context>
chip_gen: v7x
topology: tpu7x:2x2x1
jax: 0.10.0
libtpu: 0.0.40
codegen_flags: <defaults>
</compile_context>

<pallas_src>
import math

import jax
import jax.numpy as jnp
from jax import lax
from jax.experimental import pallas as pl
from jax.experimental.pallas import tpu as pltpu


def gcn_kernel(x_ref, w_ref, b_ref, adj_ref, o_ref, h_ref):
    # h = X @ W^T + b  (nn.Linear) — computed once, kept in VMEM scratch.
    @pl.when(pl.program_id(0) == 0)
    def _():
        h = lax.dot_general(
            x_ref[...], w_ref[...],
            dimension_numbers=(((1,), (1,)), ((), ())),   # contract W on axis 1 == X @ W^T
            preferred_element_type=jnp.float32)
        h_ref[...] = h + b_ref[...]                       # (1, D) bias broadcasts over rows

    # out_tile = adj_tile @ h   (torch.spmm with dense adj semantics)
    o_ref[...] = jnp.dot(adj_ref[...], h_ref[...],
                         preferred_element_type=jnp.float32).astype(o_ref.dtype)


def convolutional_layer(X, adj, W, b, *, row_tile=256):
    """X: (N, D), adj: (N, N), W: (D, D) [nn.Linear weight], b: (D,)."""
    N, D = X.shape
    b2 = b.reshape(1, D)

    # Tile the output-row axis when it divides evenly; otherwise use the full
    # extent (block shapes must be (8,128)-aligned or equal to the array dim).
    tm = row_tile if (N % row_tile == 0) else N
    grid = (N // tm,)

    flops = 2 * N * D * D + 2 * N * N * D
    bytes_accessed = 4 * (N * D + D * D + D + N * N + N * D)

    return pl.pallas_call(
        gcn_kernel,
        out_shape=jax.ShapeDtypeStruct((N, D), jnp.float32),
        grid=grid,
        in_specs=[
            pl.BlockSpec((N, D), lambda i: (0, 0)),    # X   (loop-invariant, VMEM-resident)
            pl.BlockSpec((D, D), lambda i: (0, 0)),    # W   (loop-invariant, VMEM-resident)
            pl.BlockSpec((1, D), lambda i: (0, 0)),    # b   (loop-invariant, VMEM-resident)
            pl.BlockSpec((tm, N), lambda i: (i, 0)),   # adj row tile (streamed)
        ],
        out_specs=pl.BlockSpec((tm, D), lambda i: (i, 0)),
        scratch_shapes=[pltpu.VMEM((N, D), jnp.float32)],   # h, persists across steps
        compiler_params=pltpu.CompilerParams(
            # "arbitrary": the row axis carries a scratch dependency (h is
            # written at step 0 and read by every later step).
            dimension_semantics=("arbitrary",)),
        cost_estimate=pl.CostEstimate(
            flops=flops, transcendentals=0, bytes_accessed=bytes_accessed),
    )(X, W, b2, adj)


def reference(X, adj, W, b):
    return adj @ (X @ W.T + b)


if __name__ == "__main__":
    key = jax.random.PRNGKey(0)
    N, D = 16, 32                            # num_nodes, dim

    kx, ka, kw, kb = jax.random.split(key, 4)
    X = jax.random.normal(kx, (N, D), dtype=jnp.float32)
    adj = jax.random.uniform(ka, (N, N), dtype=jnp.float32)

    # Deterministic parameter init matching the module's intent:
    # uniform(-stdv, stdv) with stdv = 1/sqrt(dim), bias like nn.Linear default.
    stdv = 1.0 / math.sqrt(D)
    W = jax.random.uniform(kw, (D, D), minval=-stdv, maxval=stdv, dtype=jnp.float32)
    b = jax.random.uniform(kb, (D,), minval=-stdv, maxval=stdv, dtype=jnp.float32)

    out = convolutional_layer(X, adj, W, b)
    out = jax.block_until_ready(out)

    ref = reference(X, adj, W, b)
    assert out.shape == (N, D)
    assert jnp.allclose(out, ref, atol=1e-4, rtol=1e-4), "mismatch vs reference"
    print("KERNEL_OK")
</pallas_src>

<mosaic_0001>
module attributes {stable_mosaic.version = 11 : i64} {
  func.func @gcn_kernel(%arg0: i32, %arg1: memref<16x32xf32, #tpu.memory_space<vmem>>, %arg2: memref<32x32xf32, #tpu.memory_space<vmem>>, %arg3: memref<1x32xf32, #tpu.memory_space<vmem>>, %arg4: memref<16x16xf32, #tpu.memory_space<vmem>>, %arg5: memref<16x32xf32, #tpu.memory_space<vmem>>, %arg6: memref<16x32xf32, #tpu.memory_space<vmem>>) attributes {dimension_semantics = [#tpu.dimension_semantics<arbitrary>], iteration_bounds = array<i64: 1>, scalar_prefetch = 0 : i64, scratch_operands = 1 : i64, tpu.core_type = #tpu.core_type<tc>, window_params = [{pipeline_mode = #tpu.pipeline_mode<synchronous>, transform_indices = @transform_0, window_bounds = array<i64: 16, 32>}, {pipeline_mode = #tpu.pipeline_mode<synchronous>, transform_indices = @transform_1, window_bounds = array<i64: 32, 32>}, {pipeline_mode = #tpu.pipeline_mode<synchronous>, transform_indices = @transform_2, window_bounds = array<i64: 1, 32>}, {transform_indices = @transform_3, window_bounds = array<i64: 16, 16>}, {transform_indices = @transform_4, window_bounds = array<i64: 16, 32>}]} {
    %c0_i32 = arith.constant 0 : i32
    %0 = arith.cmpi eq, %arg0, %c0_i32 : i32
    %1 = arith.extui %0 : i1 to i32
    %c0_i32_0 = arith.constant 0 : i32
    %2 = arith.cmpi ne, %1, %c0_i32_0 : i32
    scf.if %2 {
      %c0_6 = arith.constant 0 : index
      %c0_7 = arith.constant 0 : index
      %7 = vector.load %arg1[%c0_6, %c0_7] : memref<16x32xf32, #tpu.memory_space<vmem>>, vector<16x32xf32>
      %c0_8 = arith.constant 0 : index
      %c0_9 = arith.constant 0 : index
      %8 = vector.load %arg2[%c0_8, %c0_9] : memref<32x32xf32, #tpu.memory_space<vmem>>, vector<32x32xf32>
      %cst_10 = arith.constant dense<0.000000e+00> : vector<16x32xf32>
      %9 = tpu.matmul %7, %8, %cst_10 {dimension_numbers = #tpu.dot_dimension_numbers<[1], [1], [0], [0], [0, 0, 1, 0], [], []>} : vector<16x32xf32>, vector<32x32xf32>, vector<16x32xf32> -> vector<16x32xf32>
      %c0_11 = arith.constant 0 : index
      %c0_12 = arith.constant 0 : index
      %10 = vector.load %arg3[%c0_11, %c0_12] : memref<1x32xf32, #tpu.memory_space<vmem>>, vector<1x32xf32>
      %11 = vector.broadcast %10 : vector<1x32xf32> to vector<16x32xf32>
      %12 = arith.addf %9, %11 : vector<16x32xf32>
      %c0_13 = arith.constant 0 : index
      %c0_14 = arith.constant 0 : index
      %13 = vector.load %arg6[%c0_13, %c0_14] : memref<16x32xf32, #tpu.memory_space<vmem>>, vector<16x32xf32>
      tpu.vector_store %arg6[%c0_13, %c0_14], %12 {strides = array<i32>} : memref<16x32xf32, #tpu.memory_space<vmem>>, vector<16x32xf32>,
    } else {
    }
    %c0 = arith.constant 0 : index
    %c0_1 = arith.constant 0 : index
    %3 = vector.load %arg4[%c0, %c0_1] : memref<16x16xf32, #tpu.memory_space<vmem>>, vector<16x16xf32>
    %c0_2 = arith.constant 0 : index
    %c0_3 = arith.constant 0 : index
    %4 = vector.load %arg6[%c0_2, %c0_3] : memref<16x32xf32, #tpu.memory_space<vmem>>, vector<16x32xf32>
    %cst = arith.constant dense<0.000000e+00> : vector<16x32xf32>
    %5 = tpu.matmul %3, %4, %cst {dimension_numbers = #tpu.dot_dimension_numbers<[1], [0], [0], [1], [0, 0, 1, 1], [], []>} : vector<16x16xf32>, vector<16x32xf32>, vector<16x32xf32> -> vector<16x32xf32>
    %c0_4 = arith.constant 0 : index
    %c0_5 = arith.constant 0 : index
    %6 = vector.load %arg5[%c0_4, %c0_5] : memref<16x32xf32, #tpu.memory_space<vmem>>, vector<16x32xf32>
    tpu.vector_store %arg5[%c0_4, %c0_5], %5 {strides = array<i32>} : memref<16x32xf32, #tpu.memory_space<vmem>>, vector<16x32xf32>,
    return
  }
  func.func @transform_0(%arg0: i32) -> (i32, i32) {
    %c0_i32 = arith.constant 0 : i32
    %c0_i32_0 = arith.constant 0 : i32
    %c0_i32_1 = arith.constant 0 : i32
    return %c0_i32, %c0_i32_0 : i32, i32
  }
  func.func @transform_1(%arg0: i32) -> (i32, i32) {
    %c0_i32 = arith.constant 0 : i32
    %c0_i32_0 = arith.constant 0 : i32
    %c0_i32_1 = arith.constant 0 : i32
    return %c0_i32, %c0_i32_0 : i32, i32
  }
  func.func @transform_2(%arg0: i32) -> (i32, i32) {
    %c0_i32 = arith.constant 0 : i32
    %c0_i32_0 = arith.constant 0 : i32
    %c0_i32_1 = arith.constant 0 : i32
    return %c0_i32, %c0_i32_0 : i32, i32
  }
  func.func @transform_3(%arg0: i32) -> (i32, i32) {
    %c0_i32 = arith.constant 0 : i32
    %c0_i32_0 = arith.constant 0 : i32
    return %arg0, %c0_i32 : i32, i32
  }
  func.func @transform_4(%arg0: i32) -> (i32, i32) {
    %c0_i32 = arith.constant 0 : i32
    %c0_i32_0 = arith.constant 0 : i32
    return %arg0, %c0_i32 : i32, i32
  }
}

</mosaic_0001>

<bundles_post_ra>
// kernel: tpu_custom_call.1
= control target key start
LH: loop header
LB: loop body
LE: loop exit
PB: predicated region body
PF: predicated region fallthrough
CT: control target
= control target key end

     0   :  { %9 = vsyncpa [#allocation4], 0  ;;  %s541_s0 = inlined_call_operand.hbm [shape: f32[16,32], index: 0, kind: input, shape index: {}]   ;;  %s542_s1 = inlined_call_operand.hbm [shape: f32[32,32], index: 1, kind: input, shape index: {}]   ;;  %s543_s2 = inlined_call_operand.vmem [shape: f32[1,32], index: 2, kind: input, shape index: {}]   ;;  %s544_s3 = inlined_call_operand.hbm [shape: f32[16,16], index: 3, kind: input, shape index: {}]   ;;  %s545_s4 = inlined_call_operand.hbm [shape: f32[16,32], index: 4, kind: output, shape index: {}]  }
   0x1   :  { %10 = vsyncpa [#allocation7], 0 }
   0x2   :  { %11 = vsyncpa [#allocation5], 0  ;;  %s432_s15 = smov [#allocation6]   ;;  %s433_s17 = smov [#allocation3]  }
   0x3   :  { %s29_s16 = sshll.u32 %s432_s15, 4  ;;  %s17_s18 = sshll.u32 %s433_s17, 4  ;;  %s30_s16 = int_to_ptr.vmem [resolvable:$true] %s29_s16  ;;  %s463_s18 = int_to_ptr.vmem [resolvable:$true] %s17_s18 }
   0x4   :  { %s338_s21 = scalar_lea.hbm %s542_s1, 512 }
   0x5   :  { %p339_p0 = scmp.ne.s32.totalorder %s542_s1, %s338_s21  ;;  %p342_p1 = scmp.lt.u32.totalorder %s338_s21, %s542_s1 }
   0x7   :  { %p344_p2 = pnand %p342_p1, %p339_p0 }
   0x9   :  { %347 = shalt.err (!%p344_p2)
}
   0xa   :  { %s348_s26 = scalar_lea.vmem %s30_s16, 512  ;;  %p353_p4 = scmp.lt.s32.totalorder %s30_s16, %s30_s16 }
   0xb   :  { %p349_p3 = scmp.ne.s32.totalorder %s30_s16, %s348_s26  ;;  %p354_p5 = scmp.lt.s32.totalorder %s348_s26, %s348_s26 }
   0xd   :  { %p355_p6 = por %p354_p5, %p353_p4 }
   0xf   :  { %p356_p7 = pnand %p355_p6, %p349_p3 }
  0x11   :  { %359 = shalt.err (!%p356_p7)
}
  0x12   :  { %s434_s27 = smov 128   ;;  %s435_s28 = smov 8  }
  0x13   :  { %35 = dma.hbm_to_vmem [thread:$0]  %s542_s1, 512, %s30_s16, [#allocation7], %s434_s27, %s434_s27, %s435_s28  }
  0x14   :  { %s360_s7 = scalar_lea.hbm %s541_s0, 256 }
  0x15   :  { %p361_p8 = scmp.ne.s32.totalorder %s541_s0, %s360_s7  ;;  %p364_p9 = scmp.lt.u32.totalorder %s360_s7, %s541_s0 }
  0x17   :  { %p366_p10 = pnand %p364_p9, %p361_p8 }
  0x19   :  { %369 = shalt.err (!%p366_p10)
}
  0x1a   :  { %s370_s12 = scalar_lea.vmem %s463_s18, 256  ;;  %p375_p12 = scmp.lt.s32.totalorder %s463_s18, %s463_s18 }
  0x1b   :  { %p371_p11 = scmp.ne.s32.totalorder %s463_s18, %s370_s12  ;;  %p376_p13 = scmp.lt.s32.totalorder %s370_s12, %s370_s12 }
  0x1d   :  { %p377_p0 = por %p376_p13, %p375_p12 }
  0x1f   :  { %p378_p1 = pnand %p377_p0, %p371_p11 }
  0x21   :  { %381 = shalt.err (!%p378_p1)
}
  0x22   :  { %23 = dma.hbm_to_vmem [thread:$0]  %s541_s0, 256, %s463_s18, [#allocation4], %s434_s27, %s434_s27, %s435_s28  }
  0x23   :  { %s436_s14 = smov [#allocation8]   ;;  %s382_s19 = scalar_lea.hbm %s544_s3, 256 }
  0x24   :  { %s43_s15 = sshll.u32 %s436_s14, 4  ;;  %p383_p2 = scmp.ne.s32.totalorder %s544_s3, %s382_s19  ;;  %s44_s15 = int_to_ptr.vmem [resolvable:$true] %s43_s15 }
  0x25   :  { %p386_p3 = scmp.lt.u32.totalorder %s382_s19, %s544_s3 }
  0x27   :  { %p388_p4 = pnand %p386_p3, %p383_p2 }
  0x29   :  { %391 = shalt.err (!%p388_p4)
}
  0x2a   :  { %s392_s24 = scalar_lea.vmem %s44_s15, 256  ;;  %p397_p6 = scmp.lt.s32.totalorder %s44_s15, %s44_s15 }
  0x2b   :  { %p393_p5 = scmp.ne.s32.totalorder %s44_s15, %s392_s24  ;;  %p398_p7 = scmp.lt.s32.totalorder %s392_s24, %s392_s24 }
  0x2d   :  { %p399_p8 = por %p398_p7, %p397_p6 }
  0x2f   :  { %p400_p9 = pnand %p399_p8, %p393_p5 }
  0x31   :  { %403 = shalt.err (!%p400_p9)
}
  0x32   :  { %49 = dma.hbm_to_vmem [thread:$0]  %s544_s3, 256, %s44_s15, [#allocation7], %s434_s27, %s434_s27, %s435_s28  }
  0x33   :  { %426 = dma.done.wait [#allocation4], 256  }
  0x34   :  { %427 = vsyncadd [#allocation4], 4294967040 }
  0x35   :  { %428 = dma.done.wait [#allocation7], 768  }
  0x36   :  { %429 = vsyncadd [#allocation7], 4294966528  ;;  %vm76_vm0 = vcmask 261120   ;;  %v65_v0 = vld [vmem:[#allocation6] sm:$0xff]  ;;  %v66_v1 = vld [vmem:[#allocation6 + $0x8] sm:$0xff]  ;;  %vm176_vm2 = vcmask 130048  }
  0x37   :  { %vm317_vm1 = vmpackc.low %vm76_vm0, %vm76_vm0  ;;  %v67_v2 = vld [vmem:[#allocation6 + $0x10] sm:$0xff]  ;;  %v316_v3 = vpack.c.bf16 %v66_v1, %v65_v0  ;;  %v68_v4 = vld [vmem:[#allocation6 + $0x18] sm:$0xff]  ;;  %s437_s26 = smov [#allocation9]  }
  0x38   :  { %v63_v5 = vld [vmem:[#allocation3] sm:$0xff]  ;;  %v322_v6 = vpack.c.bf16 %v68_v4, %v67_v2  ;;  %v64_v7 = vld [vmem:[#allocation3 + $0x8] sm:$0xff]  ;;  %v172_v8 = vld [vmem:[#allocation8] sm:$0xff]  ;;  %s266_s29 = sshll.u32 %s437_s26, 4  ;;  %s267_s29 = int_to_ptr.vmem [resolvable:$true] %s266_s29 }
  0x39   :  { %306 = vmatprep.mubr.msk.f32.mxu0 %vm76_vm0, %v63_v5  ;;  %318 = vmatprep.subr.msk.bf16.mxu0 %vm317_vm1, %v316_v3  ;;  %v279_v9 = vld [vmem:[%s543_s2] ss:$0 sm:$0xff]  ;;  %v173_v17 = vld [vmem:[#allocation8 + $0x8] sm:$0xff]  ;;  %s404_s2 = scalar_lea.vmem %s267_s29, 256  ;;  %p409_p11 = scmp.lt.s32.totalorder %s267_s29, %s267_s29 }
  0x3a   :  { %321 = vmatpush3.bf16.xpose.msk.msra.mxu0 %vm317_vm1, %v316_v3  ;;  %313 = vmatprep.mubr.msk.f32.mxu1 %vm176_vm2, %v172_v8  ;;  %p405_p10 = scmp.ne.s32.totalorder %s267_s29, %s404_s2  ;;  %p410_p12 = scmp.lt.s32.totalorder %s404_s2, %s404_s2 }
  0x3b   :  { %324 = vmatprep.subr.msk.bf16.mxu0 %vm317_vm1, %v322_v6 }
  0x3c   :  { %p411_p13 = por %p410_p12, %p409_p11 }
  0x3e   :  { %p412_p0 = pnand %p411_p13, %p405_p10 }
  0x42   :  { %327 = vmatpush3.bf16.xpose.msk.msra.mxu0 %vm317_vm1, %v322_v6 }
  0x49   :  { %307 = vmatmul.mubr.msk.f32.vlgmr.msra.gmra.mrb[0].mxu0 %vm76_vm0, %v64_v7 }
 0x11c   :  { %v308_v10 = vpop.f32.mrb[0].mxu0 }
 0x11d   :  { %v167_v11 = vadd.f32 %v308_v10, %v279_v9  ;;  %v161_v12 = vpop.f32.mrb[1].mxu0 }
 0x11e   :  { %v162_v13 = vadd.f32 %v279_v9, %v161_v12 }
 0x11f   :  { %171 = vst.msk [vmem:[#allocation2 + $0x8] sm:$0xff] %vm76_vm0, %v167_v11 }
 0x120   :  { %170 = vst.msk [vmem:[#allocation2] sm:$0xff] %vm76_vm0, %v162_v13 }
 0x126   :  { %v175_v14 = vld [vmem:[#allocation2 + $0x8] sm:$0xff] }
 0x127   :  { %v174_v15 = vld [vmem:[#allocation2] sm:$0xff] }
 0x128   :  { %v328_v16 = vpack.c.bf16 %v175_v14, %v174_v15 }
 0x12a   :  { %329 = vmatprep.subr.bf16.mxu1 %v328_v16 }
 0x12b   :  { %331 = vmatpush3.bf16.msra.mxu1 %v328_v16 }
 0x12e   :  { %314 = vmatmul.mubr.msk.f32.vlgmr.msra.gmra.mrb[0].mxu1 %vm176_vm2, %v173_v17 }
 0x201   :  { %v315_v18 = vpop.f32.mrb[0].mxu1 }
 0x202   :  { %260 = vst.msk [vmem:[#allocation9 + $0x8] sm:$0xff] %vm76_vm0, %v315_v18  ;;  %v249_v19 = vpop.f32.mrb[1].mxu1 }
 0x203   :  { %259 = vst.msk [vmem:[#allocation9] sm:$0xff] %vm76_vm0, %v249_v19 }
 0x204   :  { %415 = shalt.err (!%p412_p0)
}
 0x205   :  { %s416_s6 = scalar_lea.hbm %s545_s4, 256 }
 0x206   :  { %p417_p1 = scmp.ne.s32.totalorder %s545_s4, %s416_s6  ;;  %p420_p2 = scmp.lt.u32.totalorder %s416_s6, %s545_s4 }
 0x208   :  { %p422_p3 = pnand %p420_p2, %p417_p1 }
 0x20a   :  { %425 = shalt.err (!%p422_p3)
}
 0x20b   :  { %272 = dma.vmem_to_hbm [thread:$0]  %s267_s29, 256, %s545_s4, [#allocation5], %s434_s27, %s434_s27, %s435_s28  }
 0x20c   :  { %430 = dma.done.wait [#allocation5], 256  }
 0x20d   :  { %431 = vsyncadd [#allocation5], 4294967040 }
 0x20e   :  { %276 = vsyncpa [#allocation4], 1 }
 0x20f   :  { %277 = vsyncpa [#allocation7], 1 }
 0x210   :  { %278 = vsyncpa [#allocation5], 1 }

</bundles_post_ra>
